<compile_context>
chip_gen: v5e
topology: v5e:2x2
jax: 0.10.0
libtpu: 0.0.40
codegen_flags: <defaults>
</compile_context>

<pallas_src>
import functools

import numpy as np

import jax
import jax.numpy as jnp
from jax.experimental import pallas as pl
from jax.experimental.pallas import tpu as pltpu

TAU = 2.0
V_TH = 1.0
BN_EPS = 1e-5


def _pick_blocks(T, B, C, HW):
    """Pick (t_blk, b_blk).

    Blocks big enough to amortize the ~0.35 us per-grid-step overhead, small
    enough that double-buffered in+out activation blocks plus the membrane
    scratch stay well under every generation's scoped-VMEM ceiling (v7x has
    only 64 MiB physical per TensorCore).  When B > 1 the batch axis keeps at
    least 2 grid steps so dimension_semantics=("parallel", ...) can shard it
    across v7x's two TensorCores.
    """
    budget = 24 * 1024 * 1024            # target total in-flight bytes
    max_b = B // 2 if B > 1 else 1       # >= 2 parallel grid steps when possible
    b_cands = [d for d in range(max_b, 0, -1)
               if B % d == 0 and (d * C) % 8 == 0]
    if not b_cands:                      # ragged sublane tiling: full-B fallback
        b_cands = [d for d in range(B, 0, -1)
                   if B % d == 0 and ((d * C) % 8 == 0 or d == B)]
    t_cands = [d for d in (4, 2, 1) if T % d == 0]   # t_blk <= 4 bounds vregs
    for b_blk in b_cands:                # prefer the biggest batch block
        for t_blk in t_cands:
            R = b_blk * C
            blk = t_blk * R * HW
            # 2x(in + out) double-buffering + membrane scratch (f32 worst case)
            inflight = 2 * (blk * 4 + blk * 4) + R * HW * 4
            if inflight <= budget:
                return t_blk, b_blk
    return 1, b_cands[-1]


def _dwconv_bn_lif_kernel(x_ref, w_ref, m_ref, b_ref, out_ref, v_ref, *,
                          W, t_blk):
    # grid = (B // b_blk, T // t_blk); T is the innermost (fastest) axis, so
    # the membrane-potential scratch v_ref carries LIF state across time for a
    # fixed batch block.
    @pl.when(pl.program_id(1) == 0)
    def _():
        v_ref[...] = jnp.zeros_like(v_ref)

    hw = x_ref.shape[-1]
    taps = [(dh, dw) for dh in range(3) for dw in range(3)]   # tap k = dh*3+dw

    # Hoisted once per grid step: fold the 0/1 zero-padding border mask into
    # the (BN-scale-folded) tap weight -> one (R, HW) plane per tap.  This
    # removes 8 VPU multiplies per timestep and avoids re-emitting the
    # (R,1)x(1,HW) broadcasts inside the unrolled time loop.
    mw = [m_ref[k] * w_ref[k] for k in range(9)]              # 9 x (R, HW)
    bias = b_ref[...]                                         # (R, 1)

    v = v_ref[...]                                            # (R, HW) membrane
    for tl in range(t_blk):              # static unroll, t_blk <= 4
        x = x_ref[tl].astype(jnp.float32)                     # (R, HW)

        # Depthwise 3x3 conv, stride 1, zero padding 1: 9 lane rotations (XLU,
        # otherwise idle) + masked MACs (VPU); accumulator seeded from the
        # centre tap.  shifted[:, i] == x[:, i + off]; the border masks zero
        # out every wrapped / out-of-image read.
        acc = x * mw[4]                                       # centre tap
        for k, (dh, dw) in enumerate(taps):
            if k == 4:
                continue
            off = (dh - 1) * W + (dw - 1)
            s = (-off) % hw
            xs = x if s == 0 else pltpu.roll(x, s, axis=1)
            acc = acc + xs * mw[k]

        y = acc + bias                     # folded inference-mode BatchNorm

        # LIF: charge (decay_input, tau=2), fire (v_th=1), hard reset to 0.
        v = v + (y - v) * (1.0 / TAU)
        spike = v >= V_TH
        out_ref[tl] = spike.astype(out_ref.dtype)
        v = jnp.where(spike, 0.0, v)       # select instead of sub+mul

    v_ref[...] = v


@jax.jit
def _forward_impl(x_tbchw, conv_w, gamma, beta, run_mean, run_var):
    T, B, C, H, W = x_tbchw.shape
    HW = H * W
    # Keep the minor (lane) dim a multiple of 128 -> unmasked vector stores.
    HW_pad = ((HW + 127) // 128) * 128
    t_blk, b_blk = _pick_blocks(T, B, C, HW_pad)
    R = b_blk * C

    # Native NCHW layout viewed as (T, B*C, H*W): free reshape, lane-dense.
    x = x_tbchw.reshape(T, B * C, HW)
    if HW_pad != HW:
        x = jnp.pad(x, ((0, 0), (0, 0), (0, HW_pad - HW)))

    # Spikes are exactly representable in bf16 -> halve HBM writeback, but only
    # when the row block is bf16-tile friendly ((16,128) tiling).
    out_dtype = jnp.bfloat16 if (R % 16 == 0 or R == B * C) else jnp.float32
    out_bytes = 2 if out_dtype == jnp.bfloat16 else 4

    # Fold inference-mode BatchNorm into the depthwise weights and a bias.
    inv_std = 1.0 / jnp.sqrt(run_var + BN_EPS)
    scale = gamma * inv_std                                    # (C,)
    bias_c = beta - run_mean * scale                           # (C,)
    w_folded = conv_w.reshape(C, 3, 3) * scale[:, None, None]  # (C, 3, 3)

    # Per-row constants (row = b_local*C + c); same block for every batch block.
    w_taps = jnp.transpose(w_folded.reshape(C, 9), (1, 0))     # (9, C)
    w_rows = jnp.tile(w_taps, (1, b_blk)).reshape(9, R, 1)     # (9, R, 1)
    bias_rows = jnp.tile(bias_c, (b_blk,)).reshape(R, 1)       # (R, 1)

    # 0/1 border masks implementing the zero padding of the 3x3 window
    # (compile-time constants; one (1, HW_pad) mask per tap).
    hh, ww = np.meshgrid(np.arange(H), np.arange(W), indexing="ij")
    mk = []
    for dh in range(3):
        for dw in range(3):
            oh, ow = dh - 1, dw - 1
            valid = ((hh + oh >= 0) & (hh + oh < H) &
                     (ww + ow >= 0) & (ww + ow < W)).reshape(HW)
            valid = np.concatenate([valid, np.zeros(HW_pad - HW, dtype=bool)])
            mk.append(valid.reshape(1, HW_pad))
    masks = jnp.asarray(np.stack(mk, axis=0), dtype=jnp.float32)  # (9, 1, HWp)

    # Explicit scoped-VMEM budget: double-buffered in/out blocks + scratch +
    # constants, with headroom; capped well below the v7x 64 MiB ceiling.
    blk = t_blk * R * HW_pad
    vmem_need = (2 * (blk * 4 + blk * out_bytes) + R * HW_pad * 4
                 + 2 * (9 * R * 4 + 9 * HW_pad * 4 + R * 4))
    vmem_limit = int(min(48 * 1024 * 1024,
                         max(16 * 1024 * 1024, 2 * vmem_need)))

    elems = T * B * C * HW_pad
    cost = pl.CostEstimate(flops=24 * elems, transcendentals=0,
                           bytes_accessed=elems * (4 + out_bytes))

    out = pl.pallas_call(
        functools.partial(_dwconv_bn_lif_kernel, W=W, t_blk=t_blk),
        out_shape=jax.ShapeDtypeStruct((T, B * C, HW_pad), out_dtype),
        grid_spec=pltpu.PrefetchScalarGridSpec(
            num_scalar_prefetch=0,
            grid=(B // b_blk, T // t_blk),   # T innermost -> sequential LIF state
            in_specs=[
                pl.BlockSpec((t_blk, R, HW_pad), lambda b, t: (t, b, 0)),
                pl.BlockSpec((9, R, 1), lambda b, t: (0, 0, 0)),
                pl.BlockSpec((9, 1, HW_pad), lambda b, t: (0, 0, 0)),
                pl.BlockSpec((R, 1), lambda b, t: (0, 0)),
            ],
            out_specs=pl.BlockSpec((t_blk, R, HW_pad), lambda b, t: (t, b, 0)),
            scratch_shapes=[pltpu.VMEM((R, HW_pad), jnp.float32)],
        ),
        compiler_params=pltpu.CompilerParams(
            # Batch blocks are independent -> shard across v7x's 2 TensorCores;
            # time stays "arbitrary" (sequential) for the LIF carry.
            dimension_semantics=("parallel", "arbitrary"),
            vmem_limit_bytes=vmem_limit),
        cost_estimate=cost,
    )(x, w_rows, masks, bias_rows)

    if HW_pad != HW:
        out = out[:, :, :HW]
    return out.reshape(T, B, C, H, W)


def dwconv3x3_forward(x_tbchw, conv_w, gamma, beta, run_mean, run_var):
    """x_tbchw: (T, B, C, H, W) float32; conv_w: (C, 1, 3, 3) depthwise weight.

    Returns binary spikes (bf16 when the layout allows, else f32; values are
    exactly 0/1 either way)."""
    return jax.block_until_ready(
        _forward_impl(x_tbchw, conv_w, gamma, beta, run_mean, run_var))


def _reference(x, conv_w, gamma, beta, run_mean, run_var):
    """Plain-JAX reference of the same forward semantics.

    Returns (spikes, pre-reset membrane potential)."""
    T, B, C, H, W = x.shape
    xf = x.reshape(T * B, C, H, W)
    y = jax.lax.conv_general_dilated(
        xf, conv_w, window_strides=(1, 1), padding=((1, 1), (1, 1)),
        dimension_numbers=("NCHW", "OIHW", "NCHW"), feature_group_count=C)
    inv_std = 1.0 / jnp.sqrt(run_var + BN_EPS)
    y = (y - run_mean[None, :, None, None]) * inv_std[None, :, None, None]
    y = y * gamma[None, :, None, None] + beta[None, :, None, None]
    y = y.reshape(T, B, C, H, W)

    def step(v, yt):
        v = v + (yt - v) / TAU
        s = (v >= V_TH).astype(jnp.float32)
        v_next = jnp.where(v >= V_TH, 0.0, v)
        return v_next, (s, v)

    _, (spikes, v_pre) = jax.lax.scan(
        step, jnp.zeros((B, C, H, W), jnp.float32), y)
    return spikes, v_pre


if __name__ == "__main__":
    T, B, C, H, W = 4, 2, 8, 16, 16

    key = jax.random.PRNGKey(0)
    kx, kw, kg, kb, km, kv = jax.random.split(key, 6)

    x = jax.random.normal(kx, (T, B, C, H, W), dtype=jnp.float32)
    conv_w = jax.random.normal(kw, (C, 1, 3, 3), dtype=jnp.float32) * 0.3
    gamma = 1.0 + 0.1 * jax.random.normal(kg, (C,), dtype=jnp.float32)
    beta = 0.1 * jax.random.normal(kb, (C,), dtype=jnp.float32)
    run_mean = 0.1 * jax.random.normal(km, (C,), dtype=jnp.float32)
    run_var = jax.random.uniform(kv, (C,), dtype=jnp.float32,
                                 minval=0.5, maxval=1.5)

    out = dwconv3x3_forward(x, conv_w, gamma, beta, run_mean, run_var)
    out = jax.block_until_ready(out)
    assert out.shape == (T, B, C, H, W)

    ref_spikes, ref_vpre = _reference(x, conv_w, gamma, beta, run_mean, run_var)
    out_f32 = out.astype(jnp.float32)
    mismatch = out_f32 != ref_spikes
    n_mis = int(jnp.sum(mismatch))
    # Spikes are a hard threshold.  BN folding only changes fp rounding by
    # ~1e-6, so any legitimate disagreement must sit essentially on the
    # threshold in the reference membrane potential; otherwise it is a bug.
    near_thr = jnp.abs(ref_vpre - V_TH) < 1e-3
    ok = bool(jnp.all(jnp.logical_or(~mismatch, near_thr))) or \
        n_mis <= out_f32.size // 1000
    assert ok, f"{n_mis} / {out_f32.size} spike mismatches vs reference"

    print("KERNEL_OK")
</pallas_src>

<mosaic_0001>
module attributes {stable_mosaic.version = 11 : i64} {
  func.func @_dwconv_bn_lif_kernel(%arg0: i32, %arg1: i32, %arg2: memref<4x8x256xf32, #tpu.memory_space<vmem>>, %arg3: memref<9x8x1xf32, #tpu.memory_space<vmem>>, %arg4: memref<9x1x256xf32, #tpu.memory_space<vmem>>, %arg5: memref<8x1xf32, #tpu.memory_space<vmem>>, %arg6: memref<4x8x256xf32, #tpu.memory_space<vmem>>, %arg7: memref<8x256xf32, #tpu.memory_space<vmem>>) attributes {dimension_semantics = [#tpu.dimension_semantics<parallel>, #tpu.dimension_semantics<arbitrary>], iteration_bounds = array<i64: 2, 1>, scalar_prefetch = 0 : i64, scratch_operands = 1 : i64, tpu.core_type = #tpu.core_type<tc>, window_params = [{transform_indices = @transform_0, window_bounds = array<i64: 4, 8, 256>}, {pipeline_mode = #tpu.pipeline_mode<synchronous>, transform_indices = @transform_1, window_bounds = array<i64: 9, 8, 1>}, {pipeline_mode = #tpu.pipeline_mode<synchronous>, transform_indices = @transform_2, window_bounds = array<i64: 9, 1, 256>}, {pipeline_mode = #tpu.pipeline_mode<synchronous>, transform_indices = @transform_3, window_bounds = array<i64: 8, 1>}, {transform_indices = @transform_4, window_bounds = array<i64: 4, 8, 256>}]} {
    %c0_i32 = arith.constant 0 : i32
    %0 = arith.cmpi eq, %arg1, %c0_i32 : i32
    %1 = arith.extui %0 : i1 to i32
    %c0_i32_0 = arith.constant 0 : i32
    %2 = arith.cmpi ne, %1, %c0_i32_0 : i32
    scf.if %2 {
      %cst_111 = arith.constant 0.000000e+00 : f32
      %237 = vector.broadcast %cst_111 : f32 to vector<8x256xf32>
      %c0_112 = arith.constant 0 : index
      %c0_113 = arith.constant 0 : index
      %238 = vector.load %arg7[%c0_112, %c0_113] : memref<8x256xf32, #tpu.memory_space<vmem>>, vector<8x256xf32>
      tpu.vector_store %arg7[%c0_112, %c0_113], %237 {strides = array<i32>} : memref<8x256xf32, #tpu.memory_space<vmem>>, vector<8x256xf32>,
    } else {
    }
    %c0 = arith.constant 0 : index
    %c0_1 = arith.constant 0 : index
    %c0_2 = arith.constant 0 : index
    %3 = vector.load %arg4[%c0, %c0_1, %c0_2] : memref<9x1x256xf32, #tpu.memory_space<vmem>>, vector<1x1x256xf32>
    %4 = vector.shape_cast %3 : vector<1x1x256xf32> to vector<1x256xf32>
    %c0_3 = arith.constant 0 : index
    %c0_4 = arith.constant 0 : index
    %c0_5 = arith.constant 0 : index
    %5 = vector.load %arg3[%c0_3, %c0_4, %c0_5] : memref<9x8x1xf32, #tpu.memory_space<vmem>>, vector<1x8x1xf32>
    %6 = vector.shape_cast %5 : vector<1x8x1xf32> to vector<8x1xf32>
    %7 = vector.broadcast %4 : vector<1x256xf32> to vector<8x256xf32>
    %8 = vector.broadcast %6 : vector<8x1xf32> to vector<8x256xf32>
    %9 = arith.mulf %7, %8 : vector<8x256xf32>
    %c1 = arith.constant 1 : index
    %c0_6 = arith.constant 0 : index
    %c0_7 = arith.constant 0 : index
    %10 = vector.load %arg4[%c1, %c0_6, %c0_7] : memref<9x1x256xf32, #tpu.memory_space<vmem>>, vector<1x1x256xf32>
    %11 = vector.shape_cast %10 : vector<1x1x256xf32> to vector<1x256xf32>
    %c1_8 = arith.constant 1 : index
    %c0_9 = arith.constant 0 : index
    %c0_10 = arith.constant 0 : index
    %12 = vector.load %arg3[%c1_8, %c0_9, %c0_10] : memref<9x8x1xf32, #tpu.memory_space<vmem>>, vector<1x8x1xf32>
    %13 = vector.shape_cast %12 : vector<1x8x1xf32> to vector<8x1xf32>
    %14 = vector.broadcast %11 : vector<1x256xf32> to vector<8x256xf32>
    %15 = vector.broadcast %13 : vector<8x1xf32> to vector<8x256xf32>
    %16 = arith.mulf %14, %15 : vector<8x256xf32>
    %c2 = arith.constant 2 : index
    %c0_11 = arith.constant 0 : index
    %c0_12 = arith.constant 0 : index
    %17 = vector.load %arg4[%c2, %c0_11, %c0_12] : memref<9x1x256xf32, #tpu.memory_space<vmem>>, vector<1x1x256xf32>
    %18 = vector.shape_cast %17 : vector<1x1x256xf32> to vector<1x256xf32>
    %c2_13 = arith.constant 2 : index
    %c0_14 = arith.constant 0 : index
    %c0_15 = arith.constant 0 : index
    %19 = vector.load %arg3[%c2_13, %c0_14, %c0_15] : memref<9x8x1xf32, #tpu.memory_space<vmem>>, vector<1x8x1xf32>
    %20 = vector.shape_cast %19 : vector<1x8x1xf32> to vector<8x1xf32>
    %21 = vector.broadcast %18 : vector<1x256xf32> to vector<8x256xf32>
    %22 = vector.broadcast %20 : vector<8x1xf32> to vector<8x256xf32>
    %23 = arith.mulf %21, %22 : vector<8x256xf32>
    %c3 = arith.constant 3 : index
    %c0_16 = arith.constant 0 : index
    %c0_17 = arith.constant 0 : index
    %24 = vector.load %arg4[%c3, %c0_16, %c0_17] : memref<9x1x256xf32, #tpu.memory_space<vmem>>, vector<1x1x256xf32>
    %25 = vector.shape_cast %24 : vector<1x1x256xf32> to vector<1x256xf32>
    %c3_18 = arith.constant 3 : index
    %c0_19 = arith.constant 0 : index
    %c0_20 = arith.constant 0 : index
    %26 = vector.load %arg3[%c3_18, %c0_19, %c0_20] : memref<9x8x1xf32, #tpu.memory_space<vmem>>, vector<1x8x1xf32>
    %27 = vector.shape_cast %26 : vector<1x8x1xf32> to vector<8x1xf32>
    %28 = vector.broadcast %25 : vector<1x256xf32> to vector<8x256xf32>
    %29 = vector.broadcast %27 : vector<8x1xf32> to vector<8x256xf32>
    %30 = arith.mulf %28, %29 : vector<8x256xf32>
    %c4 = arith.constant 4 : index
    %c0_21 = arith.constant 0 : index
    %c0_22 = arith.constant 0 : index
    %31 = vector.load %arg4[%c4, %c0_21, %c0_22] : memref<9x1x256xf32, #tpu.memory_space<vmem>>, vector<1x1x256xf32>
    %32 = vector.shape_cast %31 : vector<1x1x256xf32> to vector<1x256xf32>
    %c4_23 = arith.constant 4 : index
    %c0_24 = arith.constant 0 : index
    %c0_25 = arith.constant 0 : index
    %33 = vector.load %arg3[%c4_23, %c0_24, %c0_25] : memref<9x8x1xf32, #tpu.memory_space<vmem>>, vector<1x8x1xf32>
    %34 = vector.shape_cast %33 : vector<1x8x1xf32> to vector<8x1xf32>
    %35 = vector.broadcast %32 : vector<1x256xf32> to vector<8x256xf32>
    %36 = vector.broadcast %34 : vector<8x1xf32> to vector<8x256xf32>
    %37 = arith.mulf %35, %36 : vector<8x256xf32>
    %c5 = arith.constant 5 : index
    %c0_26 = arith.constant 0 : index
    %c0_27 = arith.constant 0 : index
    %38 = vector.load %arg4[%c5, %c0_26, %c0_27] : memref<9x1x256xf32, #tpu.memory_space<vmem>>, vector<1x1x256xf32>
    %39 = vector.shape_cast %38 : vector<1x1x256xf32> to vector<1x256xf32>
    %c5_28 = arith.constant 5 : index
    %c0_29 = arith.constant 0 : index
    %c0_30 = arith.constant 0 : index
    %40 = vector.load %arg3[%c5_28, %c0_29, %c0_30] : memref<9x8x1xf32, #tpu.memory_space<vmem>>, vector<1x8x1xf32>
    %41 = vector.shape_cast %40 : vector<1x8x1xf32> to vector<8x1xf32>
    %42 = vector.broadcast %39 : vector<1x256xf32> to vector<8x256xf32>
    %43 = vector.broadcast %41 : vector<8x1xf32> to vector<8x256xf32>
    %44 = arith.mulf %42, %43 : vector<8x256xf32>
    %c6 = arith.constant 6 : index
    %c0_31 = arith.constant 0 : index
    %c0_32 = arith.constant 0 : index
    %45 = vector.load %arg4[%c6, %c0_31, %c0_32] : memref<9x1x256xf32, #tpu.memory_space<vmem>>, vector<1x1x256xf32>
    %46 = vector.shape_cast %45 : vector<1x1x256xf32> to vector<1x256xf32>
    %c6_33 = arith.constant 6 : index
    %c0_34 = arith.constant 0 : index
    %c0_35 = arith.constant 0 : index
    %47 = vector.load %arg3[%c6_33, %c0_34, %c0_35] : memref<9x8x1xf32, #tpu.memory_space<vmem>>, vector<1x8x1xf32>
    %48 = vector.shape_cast %47 : vector<1x8x1xf32> to vector<8x1xf32>
    %49 = vector.broadcast %46 : vector<1x256xf32> to vector<8x256xf32>
    %50 = vector.broadcast %48 : vector<8x1xf32> to vector<8x256xf32>
    %51 = arith.mulf %49, %50 : vector<8x256xf32>
    %c7 = arith.constant 7 : index
    %c0_36 = arith.constant 0 : index
    %c0_37 = arith.constant 0 : index
    %52 = vector.load %arg4[%c7, %c0_36, %c0_37] : memref<9x1x256xf32, #tpu.memory_space<vmem>>, vector<1x1x256xf32>
    %53 = vector.shape_cast %52 : vector<1x1x256xf32> to vector<1x256xf32>
    %c7_38 = arith.constant 7 : index
    %c0_39 = arith.constant 0 : index
    %c0_40 = arith.constant 0 : index
    %54 = vector.load %arg3[%c7_38, %c0_39, %c0_40] : memref<9x8x1xf32, #tpu.memory_space<vmem>>, vector<1x8x1xf32>
    %55 = vector.shape_cast %54 : vector<1x8x1xf32> to vector<8x1xf32>
    %56 = vector.broadcast %53 : vector<1x256xf32> to vector<8x256xf32>
    %57 = vector.broadcast %55 : vector<8x1xf32> to vector<8x256xf32>
    %58 = arith.mulf %56, %57 : vector<8x256xf32>
    %c8 = arith.constant 8 : index
    %c0_41 = arith.constant 0 : index
    %c0_42 = arith.constant 0 : index
    %59 = vector.load %arg4[%c8, %c0_41, %c0_42] : memref<9x1x256xf32, #tpu.memory_space<vmem>>, vector<1x1x256xf32>
    %60 = vector.shape_cast %59 : vector<1x1x256xf32> to vector<1x256xf32>
    %c8_43 = arith.constant 8 : index
    %c0_44 = arith.constant 0 : index
    %c0_45 = arith.constant 0 : index
    %61 = vector.load %arg3[%c8_43, %c0_44, %c0_45] : memref<9x8x1xf32, #tpu.memory_space<vmem>>, vector<1x8x1xf32>
    %62 = vector.shape_cast %61 : vector<1x8x1xf32> to vector<8x1xf32>
    %63 = vector.broadcast %60 : vector<1x256xf32> to vector<8x256xf32>
    %64 = vector.broadcast %62 : vector<8x1xf32> to vector<8x256xf32>
    %65 = arith.mulf %63, %64 : vector<8x256xf32>
    %c0_46 = arith.constant 0 : index
    %c0_47 = arith.constant 0 : index
    %66 = vector.load %arg5[%c0_46, %c0_47] : memref<8x1xf32, #tpu.memory_space<vmem>>, vector<8x1xf32>
    %c0_48 = arith.constant 0 : index
    %c0_49 = arith.constant 0 : index
    %67 = vector.load %arg7[%c0_48, %c0_49] : memref<8x256xf32, #tpu.memory_space<vmem>>, vector<8x256xf32>
    %c0_50 = arith.constant 0 : index
    %c0_51 = arith.constant 0 : index
    %c0_52 = arith.constant 0 : index
    %68 = vector.load %arg2[%c0_50, %c0_51, %c0_52] : memref<4x8x256xf32, #tpu.memory_space<vmem>>, vector<1x8x256xf32>
    %69 = vector.shape_cast %68 : vector<1x8x256xf32> to vector<8x256xf32>
    %70 = arith.mulf %69, %37 : vector<8x256xf32>
    %c17_i32 = arith.constant 17 : i32
    %71 = tpu.dynamic_rotate %69 by %c17_i32 dim 1 : vector<8x256xf32>, i32 -> vector<8x256xf32>
    %72 = arith.mulf %71, %9 : vector<8x256xf32>
    %73 = arith.addf %70, %72 : vector<8x256xf32>
    %c16_i32 = arith.constant 16 : i32
    %74 = tpu.dynamic_rotate %69 by %c16_i32 dim 1 : vector<8x256xf32>, i32 -> vector<8x256xf32>
    %75 = arith.mulf %74, %16 : vector<8x256xf32>
    %76 = arith.addf %73, %75 : vector<8x256xf32>
    %c15_i32 = arith.constant 15 : i32
    %77 = tpu.dynamic_rotate %69 by %c15_i32 dim 1 : vector<8x256xf32>, i32 -> vector<8x256xf32>
    %78 = arith.mulf %77, %23 : vector<8x256xf32>
    %79 = arith.addf %76, %78 : vector<8x256xf32>
    %c1_i32 = arith.constant 1 : i32
    %80 = tpu.dynamic_rotate %69 by %c1_i32 dim 1 : vector<8x256xf32>, i32 -> vector<8x256xf32>
    %81 = arith.mulf %80, %30 : vector<8x256xf32>
    %82 = arith.addf %79, %81 : vector<8x256xf32>
    %c255_i32 = arith.constant 255 : i32
    %83 = tpu.dynamic_rotate %69 by %c255_i32 dim 1 : vector<8x256xf32>, i32 -> vector<8x256xf32>
    %84 = arith.mulf %83, %44 : vector<8x256xf32>
    %85 = arith.addf %82, %84 : vector<8x256xf32>
    %c241_i32 = arith.constant 241 : i32
    %86 = tpu.dynamic_rotate %69 by %c241_i32 dim 1 : vector<8x256xf32>, i32 -> vector<8x256xf32>
    %87 = arith.mulf %86, %51 : vector<8x256xf32>
    %88 = arith.addf %85, %87 : vector<8x256xf32>
    %c240_i32 = arith.constant 240 : i32
    %89 = tpu.dynamic_rotate %69 by %c240_i32 dim 1 : vector<8x256xf32>, i32 -> vector<8x256xf32>
    %90 = arith.mulf %89, %58 : vector<8x256xf32>
    %91 = arith.addf %88, %90 : vector<8x256xf32>
    %c239_i32 = arith.constant 239 : i32
    %92 = tpu.dynamic_rotate %69 by %c239_i32 dim 1 : vector<8x256xf32>, i32 -> vector<8x256xf32>
    %93 = arith.mulf %92, %65 : vector<8x256xf32>
    %94 = arith.addf %91, %93 : vector<8x256xf32>
    %95 = vector.broadcast %66 : vector<8x1xf32> to vector<8x256xf32>
    %96 = arith.addf %94, %95 : vector<8x256xf32>
    %97 = arith.subf %96, %67 : vector<8x256xf32>
    %cst = arith.constant 5.000000e-01 : f32
    %98 = vector.broadcast %cst : f32 to vector<8x256xf32>
    %99 = arith.mulf %97, %98 : vector<8x256xf32>
    %100 = arith.addf %67, %99 : vector<8x256xf32>
    %cst_53 = arith.constant 1.000000e+00 : f32
    %101 = vector.broadcast %cst_53 : f32 to vector<8x256xf32>
    %102 = arith.cmpf oge, %100, %101 : vector<8x256xf32>
    %103 = arith.extui %102 : vector<8x256xi1> to vector<8x256xi32>
    %104 = arith.sitofp %103 : vector<8x256xi32> to vector<8x256xf32>
    %c0_54 = arith.constant 0 : index
    %c0_55 = arith.constant 0 : index
    %c0_56 = arith.constant 0 : index
    %105 = vector.load %arg6[%c0_54, %c0_55, %c0_56] : memref<4x8x256xf32, #tpu.memory_space<vmem>>, vector<1x8x256xf32>
    %106 = vector.shape_cast %105 : vector<1x8x256xf32> to vector<8x256xf32>
    %107 = vector.shape_cast %104 : vector<8x256xf32> to vector<1x8x256xf32>
    tpu.vector_store %arg6[%c0_54, %c0_55, %c0_56], %107 {strides = array<i32>} : memref<4x8x256xf32, #tpu.memory_space<vmem>>, vector<1x8x256xf32>,
    %cst_57 = arith.constant 0.000000e+00 : f32
    %108 = vector.broadcast %cst_57 : f32 to vector<8x256xf32>
    %109 = arith.select %102, %108, %100 : vector<8x256xi1>, vector<8x256xf32>
    %c1_58 = arith.constant 1 : index
    %c0_59 = arith.constant 0 : index
    %c0_60 = arith.constant 0 : index
    %110 = vector.load %arg2[%c1_58, %c0_59, %c0_60] : memref<4x8x256xf32, #tpu.memory_space<vmem>>, vector<1x8x256xf32>
    %111 = vector.shape_cast %110 : vector<1x8x256xf32> to vector<8x256xf32>
    %112 = arith.mulf %111, %37 : vector<8x256xf32>
    %c17_i32_61 = arith.constant 17 : i32
    %113 = tpu.dynamic_rotate %111 by %c17_i32_61 dim 1 : vector<8x256xf32>, i32 -> vector<8x256xf32>
    %114 = arith.mulf %113, %9 : vector<8x256xf32>
    %115 = arith.addf %112, %114 : vector<8x256xf32>
    %c16_i32_62 = arith.constant 16 : i32
    %116 = tpu.dynamic_rotate %111 by %c16_i32_62 dim 1 : vector<8x256xf32>, i32 -> vector<8x256xf32>
    %117 = arith.mulf %116, %16 : vector<8x256xf32>
    %118 = arith.addf %115, %117 : vector<8x256xf32>
    %c15_i32_63 = arith.constant 15 : i32
    %119 = tpu.dynamic_rotate %111 by %c15_i32_63 dim 1 : vector<8x256xf32>, i32 -> vector<8x256xf32>
    %120 = arith.mulf %119, %23 : vector<8x256xf32>
    %121 = arith.addf %118, %120 : vector<8x256xf32>
    %c1_i32_64 = arith.constant 1 : i32
    %122 = tpu.dynamic_rotate %111 by %c1_i32_64 dim 1 : vector<8x256xf32>, i32 -> vector<8x256xf32>
    %123 = arith.mulf %122, %30 : vector<8x256xf32>
    %124 = arith.addf %121, %123 : vector<8x256xf32>
    %c255_i32_65 = arith.constant 255 : i32
    %125 = tpu.dynamic_rotate %111 by %c255_i32_65 dim 1 : vector<8x256xf32>, i32 -> vector<8x256xf32>
    %126 = arith.mulf %125, %44 : vector<8x256xf32>
    %127 = arith.addf %124, %126 : vector<8x256xf32>
    %c241_i32_66 = arith.constant 241 : i32
    %128 = tpu.dynamic_rotate %111 by %c241_i32_66 dim 1 : vector<8x256xf32>, i32 -> vector<8x256xf32>
    %129 = arith.mulf %128, %51 : vector<8x256xf32>
    %130 = arith.addf %127, %129 : vector<8x256xf32>
    %c240_i32_67 = arith.constant 240 : i32
    %131 = tpu.dynamic_rotate %111 by %c240_i32_67 dim 1 : vector<8x256xf32>, i32 -> vector<8x256xf32>
    %132 = arith.mulf %131, %58 : vector<8x256xf32>
    %133 = arith.addf %130, %132 : vector<8x256xf32>
    %c239_i32_68 = arith.constant 239 : i32
    %134 = tpu.dynamic_rotate %111 by %c239_i32_68 dim 1 : vector<8x256xf32>, i32 -> vector<8x256xf32>
    %135 = arith.mulf %134, %65 : vector<8x256xf32>
    %136 = arith.addf %133, %135 : vector<8x256xf32>
    %137 = vector.broadcast %66 : vector<8x1xf32> to vector<8x256xf32>
    %138 = arith.addf %136, %137 : vector<8x256xf32>
    %139 = arith.subf %138, %109 : vector<8x256xf32>
    %cst_69 = arith.constant 5.000000e-01 : f32
    %140 = vector.broadcast %cst_69 : f32 to vector<8x256xf32>
    %141 = arith.mulf %139, %140 : vector<8x256xf32>
    %142 = arith.addf %109, %141 : vector<8x256xf32>
    %cst_70 = arith.constant 1.000000e+00 : f32
    %143 = vector.broadcast %cst_70 : f32 to vector<8x256xf32>
    %144 = arith.cmpf oge, %142, %143 : vector<8x256xf32>
    %145 = arith.extui %144 : vector<8x256xi1> to vector<8x256xi32>
    %146 = arith.sitofp %145 : vector<8x256xi32> to vector<8x256xf32>
    %c1_71 = arith.constant 1 : index
    %c0_72 = arith.constant 0 : index
    %c0_73 = arith.constant 0 : index
    %147 = vector.load %arg6[%c1_71, %c0_72, %c0_73] : memref<4x8x256xf32, #tpu.memory_space<vmem>>, vector<1x8x256xf32>
    %148 = vector.shape_cast %147 : vector<1x8x256xf32> to vector<8x256xf32>
    %149 = vector.shape_cast %146 : vector<8x256xf32> to vector<1x8x256xf32>
    tpu.vector_store %arg6[%c1_71, %c0_72, %c0_73], %149 {strides = array<i32>} : memref<4x8x256xf32, #tpu.memory_space<vmem>>, vector<1x8x256xf32>,
    %cst_74 = arith.constant 0.000000e+00 : f32
    %150 = vector.broadcast %cst_74 : f32 to vector<8x256xf32>
    %151 = arith.select %144, %150, %142 : vector<8x256xi1>, vector<8x256xf32>
    %c2_75 = arith.constant 2 : index
    %c0_76 = arith.constant 0 : index
    %c0_77 = arith.constant 0 : index
    %152 = vector.load %arg2[%c2_75, %c0_76, %c0_77] : memref<4x8x256xf32, #tpu.memory_space<vmem>>, vector<1x8x256xf32>
    %153 = vector.shape_cast %152 : vector<1x8x256xf32> to vector<8x256xf32>
    %154 = arith.mulf %153, %37 : vector<8x256xf32>
    %c17_i32_78 = arith.constant 17 : i32
    %155 = tpu.dynamic_rotate %153 by %c17_i32_78 dim 1 : vector<8x256xf32>, i32 -> vector<8x256xf32>
    %156 = arith.mulf %155, %9 : vector<8x256xf32>
    %157 = arith.addf %154, %156 : vector<8x256xf32>
    %c16_i32_79 = arith.constant 16 : i32
    %158 = tpu.dynamic_rotate %153 by %c16_i32_79 dim 1 : vector<8x256xf32>, i32 -> vector<8x256xf32>
    %159 = arith.mulf %158, %16 : vector<8x256xf32>
    %160 = arith.addf %157, %159 : vector<8x256xf32>
    %c15_i32_80 = arith.constant 15 : i32
    %161 = tpu.dynamic_rotate %153 by %c15_i32_80 dim 1 : vector<8x256xf32>, i32 -> vector<8x256xf32>
    %162 = arith.mulf %161, %23 : vector<8x256xf32>
    %163 = arith.addf %160, %162 : vector<8x256xf32>
    %c1_i32_81 = arith.constant 1 : i32
    %164 = tpu.dynamic_rotate %153 by %c1_i32_81 dim 1 : vector<8x256xf32>, i32 -> vector<8x256xf32>
    %165 = arith.mulf %164, %30 : vector<8x256xf32>
    %166 = arith.addf %163, %165 : vector<8x256xf32>
    %c255_i32_82 = arith.constant 255 : i32
    %167 = tpu.dynamic_rotate %153 by %c255_i32_82 dim 1 : vector<8x256xf32>, i32 -> vector<8x256xf32>
    %168 = arith.mulf %167, %44 : vector<8x256xf32>
    %169 = arith.addf %166, %168 : vector<8x256xf32>
    %c241_i32_83 = arith.constant 241 : i32
    %170 = tpu.dynamic_rotate %153 by %c241_i32_83 dim 1 : vector<8x256xf32>, i32 -> vector<8x256xf32>
    %171 = arith.mulf %170, %51 : vector<8x256xf32>
    %172 = arith.addf %169, %171 : vector<8x256xf32>
    %c240_i32_84 = arith.constant 240 : i32
    %173 = tpu.dynamic_rotate %153 by %c240_i32_84 dim 1 : vector<8x256xf32>, i32 -> vector<8x256xf32>
    %174 = arith.mulf %173, %58 : vector<8x256xf32>
    %175 = arith.addf %172, %174 : vector<8x256xf32>
    %c239_i32_85 = arith.constant 239 : i32
    %176 = tpu.dynamic_rotate %153 by %c239_i32_85 dim 1 : vector<8x256xf32>, i32 -> vector<8x256xf32>
    %177 = arith.mulf %176, %65 : vector<8x256xf32>
    %178 = arith.addf %175, %177 : vector<8x256xf32>
    %179 = vector.broadcast %66 : vector<8x1xf32> to vector<8x256xf32>
    %180 = arith.addf %178, %179 : vector<8x256xf32>
    %181 = arith.subf %180, %151 : vector<8x256xf32>
    %cst_86 = arith.constant 5.000000e-01 : f32
    %182 = vector.broadcast %cst_86 : f32 to vector<8x256xf32>
    %183 = arith.mulf %181, %182 : vector<8x256xf32>
    %184 = arith.addf %151, %183 : vector<8x256xf32>
    %cst_87 = arith.constant 1.000000e+00 : f32
    %185 = vector.broadcast %cst_87 : f32 to vector<8x256xf32>
    %186 = arith.cmpf oge, %184, %185 : vector<8x256xf32>
    %187 = arith.extui %186 : vector<8x256xi1> to vector<8x256xi32>
    %188 = arith.sitofp %187 : vector<8x256xi32> to vector<8x256xf32>
    %c2_88 = arith.constant 2 : index
    %c0_89 = arith.constant 0 : index
    %c0_90 = arith.constant 0 : index
    %189 = vector.load %arg6[%c2_88, %c0_89, %c0_90] : memref<4x8x256xf32, #tpu.memory_space<vmem>>, vector<1x8x256xf32>
    %190 = vector.shape_cast %189 : vector<1x8x256xf32> to vector<8x256xf32>
    %191 = vector.shape_cast %188 : vector<8x256xf32> to vector<1x8x256xf32>
    tpu.vector_store %arg6[%c2_88, %c0_89, %c0_90], %191 {strides = array<i32>} : memref<4x8x256xf32, #tpu.memory_space<vmem>>, vector<1x8x256xf32>,
    %cst_91 = arith.constant 0.000000e+00 : f32
    %192 = vector.broadcast %cst_91 : f32 to vector<8x256xf32>
    %193 = arith.select %186, %192, %184 : vector<8x256xi1>, vector<8x256xf32>
    %c3_92 = arith.constant 3 : index
    %c0_93 = arith.constant 0 : index
    %c0_94 = arith.constant 0 : index
    %194 = vector.load %arg2[%c3_92, %c0_93, %c0_94] : memref<4x8x256xf32, #tpu.memory_space<vmem>>, vector<1x8x256xf32>
    %195 = vector.shape_cast %194 : vector<1x8x256xf32> to vector<8x256xf32>
    %196 = arith.mulf %195, %37 : vector<8x256xf32>
    %c17_i32_95 = arith.constant 17 : i32
    %197 = tpu.dynamic_rotate %195 by %c17_i32_95 dim 1 : vector<8x256xf32>, i32 -> vector<8x256xf32>
    %198 = arith.mulf %197, %9 : vector<8x256xf32>
    %199 = arith.addf %196, %198 : vector<8x256xf32>
    %c16_i32_96 = arith.constant 16 : i32
    %200 = tpu.dynamic_rotate %195 by %c16_i32_96 dim 1 : vector<8x256xf32>, i32 -> vector<8x256xf32>
    %201 = arith.mulf %200, %16 : vector<8x256xf32>
    %202 = arith.addf %199, %201 : vector<8x256xf32>
    %c15_i32_97 = arith.constant 15 : i32
    %203 = tpu.dynamic_rotate %195 by %c15_i32_97 dim 1 : vector<8x256xf32>, i32 -> vector<8x256xf32>
    %204 = arith.mulf %203, %23 : vector<8x256xf32>
    %205 = arith.addf %202, %204 : vector<8x256xf32>
    %c1_i32_98 = arith.constant 1 : i32
    %206 = tpu.dynamic_rotate %195 by %c1_i32_98 dim 1 : vector<8x256xf32>, i32 -> vector<8x256xf32>
    %207 = arith.mulf %206, %30 : vector<8x256xf32>
    %208 = arith.addf %205, %207 : vector<8x256xf32>
    %c255_i32_99 = arith.constant 255 : i32
    %209 = tpu.dynamic_rotate %195 by %c255_i32_99 dim 1 : vector<8x256xf32>, i32 -> vector<8x256xf32>
    %210 = arith.mulf %209, %44 : vector<8x256xf32>
    %211 = arith.addf %208, %210 : vector<8x256xf32>
    %c241_i32_100 = arith.constant 241 : i32
    %212 = tpu.dynamic_rotate %195 by %c241_i32_100 dim 1 : vector<8x256xf32>, i32 -> vector<8x256xf32>
    %213 = arith.mulf %212, %51 : vector<8x256xf32>
    %214 = arith.addf %211, %213 : vector<8x256xf32>
    %c240_i32_101 = arith.constant 240 : i32
    %215 = tpu.dynamic_rotate %195 by %c240_i32_101 dim 1 : vector<8x256xf32>, i32 -> vector<8x256xf32>
    %216 = arith.mulf %215, %58 : vector<8x256xf32>
    %217 = arith.addf %214, %216 : vector<8x256xf32>
    %c239_i32_102 = arith.constant 239 : i32
    %218 = tpu.dynamic_rotate %195 by %c239_i32_102 dim 1 : vector<8x256xf32>, i32 -> vector<8x256xf32>
    %219 = arith.mulf %218, %65 : vector<8x256xf32>
    %220 = arith.addf %217, %219 : vector<8x256xf32>
    %221 = vector.broadcast %66 : vector<8x1xf32> to vector<8x256xf32>
    %222 = arith.addf %220, %221 : vector<8x256xf32>
    %223 = arith.subf %222, %193 : vector<8x256xf32>
    %cst_103 = arith.constant 5.000000e-01 : f32
    %224 = vector.broadcast %cst_103 : f32 to vector<8x256xf32>
    %225 = arith.mulf %223, %224 : vector<8x256xf32>
    %226 = arith.addf %193, %225 : vector<8x256xf32>
    %cst_104 = arith.constant 1.000000e+00 : f32
    %227 = vector.broadcast %cst_104 : f32 to vector<8x256xf32>
    %228 = arith.cmpf oge, %226, %227 : vector<8x256xf32>
    %229 = arith.extui %228 : vector<8x256xi1> to vector<8x256xi32>
    %230 = arith.sitofp %229 : vector<8x256xi32> to vector<8x256xf32>
    %c3_105 = arith.constant 3 : index
    %c0_106 = arith.constant 0 : index
    %c0_107 = arith.constant 0 : index
    %231 = vector.load %arg6[%c3_105, %c0_106, %c0_107] : memref<4x8x256xf32, #tpu.memory_space<vmem>>, vector<1x8x256xf32>
    %232 = vector.shape_cast %231 : vector<1x8x256xf32> to vector<8x256xf32>
    %233 = vector.shape_cast %230 : vector<8x256xf32> to vector<1x8x256xf32>
    tpu.vector_store %arg6[%c3_105, %c0_106, %c0_107], %233 {strides = array<i32>} : memref<4x8x256xf32, #tpu.memory_space<vmem>>, vector<1x8x256xf32>,
    %cst_108 = arith.constant 0.000000e+00 : f32
    %234 = vector.broadcast %cst_108 : f32 to vector<8x256xf32>
    %235 = arith.select %228, %234, %226 : vector<8x256xi1>, vector<8x256xf32>
    %c0_109 = arith.constant 0 : index
    %c0_110 = arith.constant 0 : index
    %236 = vector.load %arg7[%c0_109, %c0_110] : memref<8x256xf32, #tpu.memory_space<vmem>>, vector<8x256xf32>
    tpu.vector_store %arg7[%c0_109, %c0_110], %235 {strides = array<i32>} : memref<8x256xf32, #tpu.memory_space<vmem>>, vector<8x256xf32>,
    return
  }
  func.func @transform_0(%arg0: i32, %arg1: i32) -> (i32, i32, i32) {
    %c0_i32 = arith.constant 0 : i32
    %c0_i32_0 = arith.constant 0 : i32
    return %arg1, %arg0, %c0_i32 : i32, i32, i32
  }
  func.func @transform_1(%arg0: i32, %arg1: i32) -> (i32, i32, i32) {
    %c0_i32 = arith.constant 0 : i32
    %c0_i32_0 = arith.constant 0 : i32
    %c0_i32_1 = arith.constant 0 : i32
    %c0_i32_2 = arith.constant 0 : i32
    return %c0_i32, %c0_i32_0, %c0_i32_1 : i32, i32, i32
  }
  func.func @transform_2(%arg0: i32, %arg1: i32) -> (i32, i32, i32) {
    %c0_i32 = arith.constant 0 : i32
    %c0_i32_0 = arith.constant 0 : i32
    %c0_i32_1 = arith.constant 0 : i32
    %c0_i32_2 = arith.constant 0 : i32
    return %c0_i32, %c0_i32_0, %c0_i32_1 : i32, i32, i32
  }
  func.func @transform_3(%arg0: i32, %arg1: i32) -> (i32, i32) {
    %c0_i32 = arith.constant 0 : i32
    %c0_i32_0 = arith.constant 0 : i32
    %c0_i32_1 = arith.constant 0 : i32
    return %c0_i32, %c0_i32_0 : i32, i32
  }
  func.func @transform_4(%arg0: i32, %arg1: i32) -> (i32, i32, i32) {
    %c0_i32 = arith.constant 0 : i32
    %c0_i32_0 = arith.constant 0 : i32
    return %arg1, %arg0, %c0_i32 : i32, i32, i32
  }
}

</mosaic_0001>

<bundles_post_ra>
// kernel: _forward_impl.1
= control target key start
LH: loop header
LB: loop body
LE: loop exit
PB: predicated region body
PF: predicated region fallthrough
CT: control target
= control target key end

     0   :  { %s1125_s15 = smov 0   ;;  %s1127_s16 = smov 0   ;;  %s1818_s0 = inlined_call_operand.vmem [shape: f32[4,16,256], index: 0, kind: input, shape index: {}]   ;;  %s1819_s1 = inlined_call_operand.vmem [shape: f32[9,8,1], index: 1, kind: input, shape index: {}]   ;;  %s1820_s2 = inlined_call_operand.vmem [shape: f32[9,1,256], index: 2, kind: input, shape index: {}]   ;;  %s1821_s3 = inlined_call_operand.vmem [shape: f32[8,1], index: 3, kind: input, shape index: {}]   ;;  %s1822_s4 = inlined_call_operand.vmem [shape: f32[4,16,256], index: 4, kind: output, shape index: {}]  }
   0x1   :  { %s1129_s17 = smov 0   ;;  %s1131_s18 = smov 0  }
   0x2   :  { %s1133_s19 = smov 0  }
   0x3 LB: > { %s26_s20 = sadd.s32 1, %s1084_s18  ;;  %s944_s21 = sadd.s32 4294967295, %s1088_s19   ;;  %s1088_s19 = sphi %s1133_s19, %s14_s19   ;;  %s1084_s18 = sphi %s1131_s18, %s1827_s18   ;;  %s1080_s17 = sphi %s1129_s17, %s1826_s17   ;;  %s1076_s16 = sphi %s1127_s16, %s1825_s16   ;;  %s1072_s15 = sphi %s1125_s15, %s1824_s15  }
   0x4   : > { %p28_p0 = scmp.ge.s32.totalorder %s26_s20, 2  ;;  %p42_p1 = scmp.ne.s32.totalorder %s1076_s16, %s1072_s15 }
   0x5   : > { %p43_p2 = scmp.eq.s32.totalorder %s1088_s19, 0  ;;  %p137_p4 = scmp.eq.s32.totalorder %s944_s21, 1 }
   0x6   : > { %s1829_s20 = smov (%p28_p0, %s26_s20), 0  ;;  %s35_s23 = sadd.s32 1, %s1076_s16 }
   0x7   : > { %p44_p3 = por %p43_p2, %p42_p1  ;;  %s31_s22 = ssub.s32 %s1084_s18, %s1829_s20 }
   0x8   : > { %p33_p5 = scmp.eq.s32.totalorder %s31_s22, 0  ;;  %p1160_p6 = por %p137_p4, %p42_p1 }
   0x9   : > { %p947_p7 = scmp.ge.s32.totalorder %s1088_s19, 2 }
   0xa   : > { %s1165_s25 = scalar_select %p33_p5, %s1076_s16, %s35_s23  }
   0xb   : > { %168 = sbr.rel (%p947_p7) target bundleno = 28 (0x1c), region = 28 }
  0x10   : > { %171 = sbr.rel (!%p44_p3) target bundleno = 28 (0x1c), region = 32  ;;  %s173_s26 = sand.u32 (%p44_p3), 1, %s1076_s16  }
  0x11   : > { %s995_s27 = sshll.u32 (%p44_p3), %s1084_s18, 4  ;;  %s948_s28 = sshll.u32 (%p44_p3), %s173_s26, 6 }
  0x12   : > { %s181_s5 = scalar_lea.vmem (%p44_p3), %s1818_s0, %s995_s27  ;;  %s175_s6 = scalar_lea.vmem (%p44_p3), [#allocation3], %s948_s28 }
  0x13   : > { %v194_v0 = vld [vmem:[%s181_s5] sm:$0xff] (%p44_p3)  ;;  %v196_v1 = vld [vmem:[%s181_s5 + $0x8] sm:$0xff] (%p44_p3) }
  0x14   : > { %v198_v2 = vld [vmem:[%s181_s5 + $0x20] sm:$0xff] (%p44_p3)  ;;  %195 = vst [vmem:[%s175_s6] sm:$0xff] (%p44_p3), %v194_v0  ;;  %v200_v3 = vld [vmem:[%s181_s5 + $0x28] sm:$0xff] (%p44_p3) }
  0x15   : > { %197 = vst [vmem:[%s175_s6 + $0x8] sm:$0xff] %v196_v1  ;;  %v202_v4 = vld [vmem:[%s181_s5 + $0x40] sm:$0xff]  ;;  %v204_v5 = vld [vmem:[%s181_s5 + $0x48] sm:$0xff] }
  0x16   : > { %199 = vst [vmem:[%s175_s6 + $0x10] sm:$0xff] %v198_v2  ;;  %v206_v6 = vld [vmem:[%s181_s5 + $0x60] sm:$0xff]  ;;  %v208_v7 = vld [vmem:[%s181_s5 + $0x68] sm:$0xff] }
  0x17   : > { %201 = vst [vmem:[%s175_s6 + $0x18] sm:$0xff] %v200_v3 }
  0x18   : > { %203 = vst [vmem:[%s175_s6 + $0x20] sm:$0xff] %v202_v4 }
  0x19   : > { %205 = vst [vmem:[%s175_s6 + $0x28] sm:$0xff] %v204_v5 }
  0x1a   : > { %207 = vst [vmem:[%s175_s6 + $0x30] sm:$0xff] %v206_v6 }
  0x1b   : > { %209 = vst [vmem:[%s175_s6 + $0x38] sm:$0xff] %v208_v7 }
  0x1c PF: > { %p951_p8 = scmp.ge.s32.totalorder %s1088_s19, 1  ;;  %p214_p9 = scmp.lt.s32.totalorder %s1088_s19, 3 }
  0x1e   : > { %p215_p10 = pnand %p951_p8, %p214_p9 }
  0x1f   : > { %s221_s27 = sand.u32 (!%p215_p10), 1, %s1072_s15   ;;  %s1091_s15 = smov (!%p215_p10), 17  }
  0x20   : > { %218 = sbr.rel (%p215_p10) target bundleno = 371 (0x173), region = 55  ;;  %s1200_s6 = sshll.u32 (!%p215_p10), %s221_s27, 6 }
  0x21   : > { %s1206_s9 = scalar_lea.vmem (!%p215_p10), [#allocation3], %s1200_s6  ;;  %s1092_s10 = smov (!%p215_p10), 16  }
  0x22   : > { %s1093_s11 = smov (!%p215_p10), 15   ;;  %s1094_s12 = smov (!%p215_p10), 1  }
  0x23   : > { %s1095_s13 = smov (!%p215_p10), 127   ;;  %s1096_s14 = smov (!%p215_p10), 113  }
  0x24   : > { %s1097_s21 = smov (!%p215_p10), 112   ;;  %s1098_s22 = smov (!%p215_p10), 111  }
  0x25   : > { %v957_v8 = vld [vmem:[%s1819_s1 + $0x10] sm:$0xff]  ;;  %v254_v9 = vld [vmem:[%s1819_s1] sm:$0xff]  ;;  %v1090_v10 = vmov 0   ;;  %v959_v12 = vld [vmem:[%s1819_s1 + $0x18] sm:$0xff]  ;;  %v406_v42 = vlaneseq }
  0x26   : > { %1048 = vset.pattern.permute.xlu1 %v1090_v10  ;;  %1047 = vset.pattern.permute.xlu0 %v1090_v10  ;;  %v961_v11 = vld [vmem:[%s1819_s1 + $0x20] sm:$0xff]  ;;  %v955_v13 = vld [vmem:[%s1819_s1 + $0x8] sm:$0xff]  ;;  %v967_v15 = vld [vmem:[%s1819_s1 + $0x38] sm:$0xff] }
  0x27   : > { %294 = vperm.xlu1 %1048, %v957_v8   ;;  %262 = vperm.xlu0 %1047, %v254_v9   ;;  %v963_v14 = vld [vmem:[%s1819_s1 + $0x28] sm:$0xff]  ;;  %v965_v16 = vld [vmem:[%s1819_s1 + $0x30] sm:$0xff]  ;;  %v969_v17 = vld [vmem:[%s1819_s1 + $0x40] sm:$0xff]  ;;  %v1356_v47 = vand.u32 127, %v406_v42 }
  0x28   : > { %1049 = vset.pattern.permute.xlu2 %v1090_v10  ;;  %v1209_v18 = vld [vmem:[%s1206_s9 + $0x8] sm:$0xff]  ;;  %v1212_v19 = vld [vmem:[%s1206_s9] sm:$0xff]  ;;  %v1250_v21 = vld [vmem:[%s1206_s9 + $0x10] sm:$0xff] }
  0x29   : > { %326 = vperm.xlu2 %1049, %v961_v11   ;;  %v395_v20 = vld [vmem:[%s1821_s3] sm:$0xff]  ;;  %v1255_v22 = vld [vmem:[%s1206_s9 + $0x18] sm:$0xff]  ;;  %v1294_v26 = vld [vmem:[%s1206_s9 + $0x28] sm:$0xff]  ;;  %vm408_vm0 = vcmp.lt.s32.totalorder %v1356_v47, 17  ;;  %vm419_vm1 = vcmp.lt.s32.totalorder %v1356_v47, 16  ;;  %vm430_vm2 = vcmp.lt.s32.totalorder %v1356_v47, 15 }
  0x2a   : > { %v1297_v27 = vld [vmem:[%s1206_s9 + $0x20] sm:$0xff]  ;;  %v1330_v37 = vld [vmem:[%s1206_s9 + $0x30] sm:$0xff]  ;;  %v1337_v38 = vld [vmem:[%s1206_s9 + $0x38] sm:$0xff]  ;;  %vm441_vm3 = vcmp.lt.s32.totalorder %v1356_v47, 1  ;;  %vm452_vm4 = vcmp.lt.s32.totalorder %v1356_v47, 127  ;;  %vm463_vm5 = vcmp.lt.s32.totalorder %v1356_v47, 113 }
  0x2b   : > { %v960_v46 = vld [vmem:[%s1820_s2 + $0x8] sm:$0x3]  ;;  %v253_v48 = vld [vmem:[%s1820_s2] sm:$0x3]  ;;  %v954_v49 = vld [vmem:[%s1820_s2 + $0x2] sm:$0x3] }
  0x2c   : > { %v321_v50 = vperm.slane %v960_v46, 1  ;;  %v320_v51 = vperm.slane %v960_v46, 0  ;;  %v256_v52 = vperm.slane %v253_v48, 0  ;;  %v257_v53 = vperm.slane %v253_v48, 1  ;;  %v962_v56 = vld [vmem:[%s1820_s2 + $0xa] sm:$0x3] }
  0x2d   : > { %v272_v57 = vperm.slane %v954_v49, 0  ;;  %v956_v58 = vld [vmem:[%s1820_s2 + $0x4] sm:$0x3]  ;;  %v273_v59 = vperm.slane %v954_v49, 1  ;;  %v336_v1 = vperm.slane %v962_v56, 0  ;;  %vm474_vm6 = vcmp.lt.s32.totalorder %v1356_v47, 112 }
  0x2e   : > { %v958_v4 = vld [vmem:[%s1820_s2 + $0x6] sm:$0x3]  ;;  %v288_v5 = vperm.slane %v956_v58, 0  ;;  %v289_v9 = vperm.slane %v956_v58, 1  ;;  %v1408_v11 = vld [vmem:[%s1820_s2 + $0xe] sm:$0x3] }
  0x2f   : > { %310 = vperm.xlu1 %1048, %v959_v12   ;;  %278 = vperm.xlu0 %1047, %v955_v13   ;;  %v369_v58 = vperm.slane %v1408_v11, 1  ;;  %vm485_vm7 = vcmp.lt.s32.totalorder %v1356_v47, 111 }
  0x31   : > { %342 = vperm.xlu2 %1049, %v963_v14   ;;  %v304_v14 = vperm.slane %v958_v4, 0 }
  0x37   : > { %374 = vperm.xlu1 %1048, %v967_v15   ;;  %358 = vperm.xlu0 %1047, %v965_v16   ;;  %v305_v15 = vperm.slane %v958_v4, 1 }
  0x39   : > { %390 = vperm.xlu2 %1049, %v969_v17  }
  0x3f   : > { %404 = vrot.lane.b32.xlu1 %v1209_v18, %s1091_s15  ;;  %402 = vrot.lane.b32.xlu0 %v1212_v19, %s1091_s15 }
  0x41   : > { %415 = vrot.lane.b32.xlu2 %v1212_v19, %s1092_s10 }
  0x47   : > { %426 = vrot.lane.b32.xlu1 %v1212_v19, %s1093_s11  ;;  %417 = vrot.lane.b32.xlu0 %v1209_v18, %s1092_s10 }
  0x49   : > { %428 = vrot.lane.b32.xlu2 %v1209_v18, %s1093_s11 }
  0x4f   : > { %439 = vrot.lane.b32.xlu1 %v1209_v18, %s1094_s12  ;;  %437 = vrot.lane.b32.xlu0 %v1212_v19, %s1094_s12 }
  0x51   : > { %448 = vrot.lane.b32.xlu2 %v1212_v19, %s1095_s13 }
  0x57   : > { %459 = vrot.lane.b32.xlu1 %v1212_v19, %s1096_s14  ;;  %450 = vrot.lane.b32.xlu0 %v1209_v18, %s1095_s13 }
  0x59   : > { %461 = vrot.lane.b32.xlu2 %v1209_v18, %s1096_s14 }
  0x5f   : > { %472 = vrot.lane.b32.xlu1 %v1209_v18, %s1097_s21  ;;  %470 = vrot.lane.b32.xlu0 %v1212_v19, %s1097_s21 }
  0x61   : > { %481 = vrot.lane.b32.xlu2 %v1212_v19, %s1098_s22 }
  0x67   : > { %494 = vperm.xlu1 %1048, %v395_v20   ;;  %483 = vrot.lane.b32.xlu0 %v1209_v18, %s1098_s22 }
  0x69   : > { %520 = vrot.lane.b32.xlu2 %v1250_v21, %s1091_s15 }
  0x6f   : > { %530 = vrot.lane.b32.xlu1 %v1250_v21, %s1092_s10  ;;  %522 = vrot.lane.b32.xlu0 %v1255_v22, %s1091_s15 }
  0x71   : > { %532 = vrot.lane.b32.xlu2 %v1255_v22, %s1092_s10 }
  0x77   : > { %542 = vrot.lane.b32.xlu1 %v1255_v22, %s1093_s11  ;;  %540 = vrot.lane.b32.xlu0 %v1250_v21, %s1093_s11 }
  0x79   : > { %550 = vrot.lane.b32.xlu2 %v1250_v21, %s1094_s12 }
  0x7f   : > { %560 = vrot.lane.b32.xlu1 %v1250_v21, %s1095_s13  ;;  %552 = vrot.lane.b32.xlu0 %v1255_v22, %s1094_s12 }
  0x81   : > { %562 = vrot.lane.b32.xlu2 %v1255_v22, %s1095_s13 }
  0x83   : > { %v1275_v23 = vpop.permute.xlu2 %326 }
  0x84   : > { %v1381_v61 = vmul.f32 %v1275_v23, %v321_v50  ;;  %v1388_v0 = vmul.f32 %v1275_v23, %v320_v51 }
  0x86   : > { %v401_v16 = vmul.f32 %v1209_v18, %v1381_v61  ;;  %v400_v17 = vmul.f32 %v1212_v19, %v1388_v0  ;;  %v368_v19 = vperm.slane %v1408_v11, 0 }
  0x87   : > { %572 = vrot.lane.b32.xlu1 %v1255_v22, %s1096_s14  ;;  %570 = vrot.lane.b32.xlu0 %v1250_v21, %s1096_s14 }
  0x89   : > { %580 = vrot.lane.b32.xlu2 %v1250_v21, %s1097_s21 }
  0x8b   : > { %v1283_v24 = vpop.permute.xlu2 %342 }
  0x8f   : > { %590 = vrot.lane.b32.xlu1 %v1250_v21, %s1098_s22  ;;  %582 = vrot.lane.b32.xlu0 %v1255_v22, %s1097_s21 }
  0x91   : > { %592 = vrot.lane.b32.xlu2 %v1255_v22, %s1098_s22 }
  0x93   : > { %v1291_v25 = vpop.permute.xlu2 %390 }
  0x97   : > { %626 = vrot.lane.b32.xlu1 %v1294_v26, %s1091_s15  ;;  %624 = vrot.lane.b32.xlu0 %v1297_v27, %s1091_s15 }
  0x99   : > { %v1303_v28 = vpop.permute.xlu1 %294  ;;  %v263_v29 = vpop.permute.xlu0 %262  ;;  %634 = vrot.lane.b32.xlu2 %v1297_v27, %s1092_s10 }
  0x9a   : > { %v1390_v2 = vmul.f32 %v263_v29, %v256_v52  ;;  %v1392_v3 = vmul.f32 %v263_v29, %v257_v53  ;;  %v1430_v18 = vmul.f32 %v1303_v28, %v288_v5  ;;  %v1441_v48 = vmul.f32 %v1303_v28, %v289_v9  ;;  %v964_v28 = vld [vmem:[%s1820_s2 + $0xc] sm:$0x3] }
  0x9b   : > { %v416_v30 = vpop.permute.xlu2 %415 }
  0x9f   : > { %644 = vrot.lane.b32.xlu1 %v1297_v27, %s1093_s11  ;;  %636 = vrot.lane.b32.xlu0 %v1294_v26, %s1092_s10 }
  0xa1   : > { %v1311_v31 = vpop.permute.xlu1 %310  ;;  %v279_v32 = vpop.permute.xlu0 %278  ;;  %646 = vrot.lane.b32.xlu2 %v1294_v26, %s1093_s11 }
  0xa2   : > { %v1397_v6 = vmul.f32 %v279_v32, %v272_v57  ;;  %v1403_v10 = vmul.f32 %v279_v32, %v273_v59  ;;  %v337_v32 = vperm.slane %v962_v56, 1  ;;  %v1452_v52 = vmul.f32 %v1311_v31, %v304_v14 }
  0xa3   : > { %v1315_v33 = vpop.permute.xlu2 %428  ;;  %v1455_v53 = vmul.f32 %v1311_v31, %v305_v15 }
  0xa7   : > { %656 = vrot.lane.b32.xlu1 %v1294_v26, %s1094_s12  ;;  %654 = vrot.lane.b32.xlu0 %v1297_v27, %s1094_s12 }
  0xa9   : > { %v1321_v34 = vpop.permute.xlu1 %374  ;;  %v1323_v35 = vpop.permute.xlu0 %358  ;;  %664 = vrot.lane.b32.xlu2 %v1297_v27, %s1095_s13 }
  0xab   : > { %v1327_v36 = vpop.permute.xlu2 %448 }
  0xaf   : > { %728 = vrot.lane.b32.xlu1 %v1330_v37, %s1091_s15  ;;  %666 = vrot.lane.b32.xlu0 %v1294_v26, %s1095_s13 }
  0xb1   : > { %v405_v39 = vpop.permute.xlu1 %404  ;;  %v403_v40 = vpop.permute.xlu0 %402  ;;  %730 = vrot.lane.b32.xlu2 %v1337_v38, %s1091_s15 }
  0xb2   : > { %v409_v62 = vsel %vm408_vm0, %v403_v40, %v405_v39  ;;  %v410_v63 = vsel %vm408_vm0, %v405_v39, %v403_v40  ;;  %v1427_v39 = vmul.f32 %v1283_v24, %v336_v1 }
  0xb3   : > { %v1341_v41 = vpop.permute.xlu2 %461  ;;  %v411_v12 = vmul.f32 %v410_v63, %v1390_v2  ;;  %v412_v13 = vmul.f32 %v409_v62, %v1392_v3  ;;  %v352_v63 = vperm.slane %v964_v28, 0 }
  0xb5   : > { %v413_v40 = vadd.f32 %v411_v12, %v400_v17  ;;  %v414_v42 = vadd.f32 %v412_v13, %v401_v16  ;;  %v1488_v13 = vmul.f32 %v1321_v34, %v368_v19  ;;  %v1506_v19 = vmul.f32 %v1321_v34, %v369_v58 }
  0xb7   : > { %676 = vrot.lane.b32.xlu1 %v1294_v26, %s1096_s14  ;;  %674 = vrot.lane.b32.xlu0 %v1297_v27, %s1096_s14 }
  0xb9   : > { %v1347_v43 = vpop.permute.xlu1 %426  ;;  %v418_v44 = vpop.permute.xlu0 %417  ;;  %738 = vrot.lane.b32.xlu2 %v1330_v37, %s1092_s10 }
  0xba   : > { %v420_v7 = vsel %vm419_vm1, %v416_v30, %v418_v44  ;;  %v421_v8 = vsel %vm419_vm1, %v418_v44, %v416_v30  ;;  %v432_v44 = vsel %vm430_vm2, %v1315_v33, %v1347_v43  ;;  %v431_v49 = vsel %vm430_vm2, %v1347_v43, %v1315_v33 }
  0xbb   : > { %v1351_v45 = vpop.permute.xlu2 %481  ;;  %v422_v20 = vmul.f32 %v421_v8, %v1397_v6  ;;  %v423_v23 = vmul.f32 %v420_v7, %v1403_v10  ;;  %v1461_v33 = vmul.f32 %v1283_v24, %v337_v32  ;;  %v433_v43 = vmul.f32 %v432_v44, %v1430_v18 }
  0xbc   : > { %v434_v59 = vmul.f32 %v431_v49, %v1441_v48 }
  0xbd   : > { %v424_v56 = vadd.f32 %v422_v20, %v413_v40  ;;  %v425_v57 = vadd.f32 %v423_v23, %v414_v42  ;;  %v1496_v20 = vmul.f32 %v1323_v35, %v352_v63 }
  0xbf   : > { %684 = vrot.lane.b32.xlu1 %v1297_v27, %s1097_s21  ;;  %740 = vrot.lane.b32.xlu0 %v1337_v38, %s1092_s10  ;;  %v436_v1 = vadd.f32 %v434_v59, %v425_v57  ;;  %v435_v4 = vadd.f32 %v433_v43, %v424_v56 }
  0xc1   : > { %v440_v54 = vpop.permute.xlu1 %439  ;;  %v438_v55 = vpop.permute.xlu0 %437  ;;  %686 = vrot.lane.b32.xlu2 %v1294_v26, %s1097_s21 }
  0xc2   : > { %v442_v50 = vsel %vm441_vm3, %v438_v55, %v440_v54  ;;  %v443_v51 = vsel %vm441_vm3, %v440_v54, %v438_v55  ;;  %v968_v55 = vld [vmem:[%s1820_s2 + $0x10] sm:$0x3] }
  0xc3   : > { %v1378_v60 = vpop.permute.xlu2 %520  ;;  %v444_v24 = vmul.f32 %v443_v51, %v1452_v52  ;;  %v445_v62 = vmul.f32 %v442_v50, %v1455_v53  ;;  %v384_v11 = vperm.slane %v968_v55, 0  ;;  %v385_v12 = vperm.slane %v968_v55, 1 }
  0xc5   : > { %v446_v14 = vadd.f32 %v444_v24, %v435_v4  ;;  %v447_v15 = vadd.f32 %v445_v62, %v436_v1  ;;  %v1521_v34 = vmul.f32 %v1291_v25, %v384_v11 }
  0xc7   : > { %750 = vrot.lane.b32.xlu1 %v1337_v38, %s1093_s11  ;;  %748 = vrot.lane.b32.xlu0 %v1330_v37, %s1093_s11 }
  0xc9   : > { %v460_v29 = vpop.permute.xlu1 %459  ;;  %v451_v30 = vpop.permute.xlu0 %450  ;;  %694 = vrot.lane.b32.xlu2 %v1297_v27, %s1098_s22 }
  0xca   : > { %v453_v54 = vsel %vm452_vm4, %v1327_v36, %v451_v30  ;;  %v454_v31 = vsel %vm452_vm4, %v451_v30, %v1327_v36  ;;  %v353_v36 = vperm.slane %v964_v28, 1  ;;  %v464_v16 = vsel %vm463_vm5, %v460_v29, %v1341_v41 }
  0xcb   : > { %v1438_v46 = vpop.permute.xlu2 %532  ;;  %v455_v5 = vmul.f32 %v453_v54, %v1427_v39  ;;  %v456_v7 = vmul.f32 %v454_v31, %v1461_v33  ;;  %v465_v23 = vsel %vm463_vm5, %v1341_v41, %v460_v29  ;;  %v466_v49 = vmul.f32 %v464_v16, %v1496_v20 }
  0xcc   : > { %v1509_v40 = vmul.f32 %v1323_v35, %v353_v36  ;;  %v1524_v35 = vmul.f32 %v1291_v25, %v385_v12 }
  0xcd   : > { %v457_v42 = vadd.f32 %v455_v5, %v446_v14  ;;  %v458_v44 = vadd.f32 %v456_v7, %v447_v15  ;;  %v1099_v7 = vmov 0.0  }
  0xce   : > { %v467_v50 = vmul.f32 %v465_v23, %v1509_v40 }
  0xcf   : > { %758 = vrot.lane.b32.xlu1 %v1330_v37, %s1094_s12  ;;  %696 = vrot.lane.b32.xlu0 %v1294_v26, %s1098_s22  ;;  %v468_v28 = vadd.f32 %v466_v49, %v457_v42  ;;  %v518_v49 = vmul.f32 %v1250_v21, %v1388_v0 }
  0xd0   : > { %v469_v51 = vadd.f32 %v467_v50, %v458_v44  ;;  %v519_v50 = vmul.f32 %v1255_v22, %v1381_v61 }
  0xd1   : > { %v473_v8 = vpop.permute.xlu1 %472  ;;  %v471_v9 = vpop.permute.xlu0 %470  ;;  %760 = vrot.lane.b32.xlu2 %v1337_v38, %s1094_s12  ;;  %s1559_s12 = scalar_lea.vmem [#allocation4], %s1200_s6  ;;  %s996_s6 = sshll.u32 (%p1160_p6), %s1080_s17, 4 }
  0xd2   : > { %v475_v30 = vsel %vm474_vm6, %v471_v9, %v473_v8  ;;  %v476_v32 = vsel %vm474_vm6, %v473_v8, %v471_v9 }
  0xd3   : > { %v1493_v17 = vpop.permute.xlu2 %550  ;;  %v477_v41 = vmul.f32 %v475_v30, %v1488_v13  ;;  %v478_v29 = vmul.f32 %v476_v32, %v1506_v19 }
  0xd5   : > { %v479_v31 = vadd.f32 %v477_v41, %v468_v28  ;;  %v480_v55 = vadd.f32 %v478_v29, %v469_v51 }
  0xd7   : > { %770 = vrot.lane.b32.xlu1 %v1337_v38, %s1095_s13  ;;  %768 = vrot.lane.b32.xlu0 %v1330_v37, %s1095_s13 }
  0xd9   : > { %v1526_v56 = vpop.permute.xlu1 %494  ;;  %v484_v57 = vpop.permute.xlu0 %483  ;;  %778 = vrot.lane.b32.xlu2 %v1330_v37, %s1096_s14 }
  0xda   : > { %v486_v43 = vsel %vm485_vm7, %v1351_v45, %v484_v57  ;;  %v487_v54 = vsel %vm485_vm7, %v484_v57, %v1351_v45 }
  0xdb   : > { %v488_v25 = vmul.f32 %v486_v43, %v1521_v34  ;;  %v489_v58 = vmul.f32 %v487_v54, %v1524_v35  ;;  %v563_v59 = vpop.permute.xlu2 %562 }
  0xdd   : > { %v490_v24 = vadd.f32 %v488_v25, %v479_v31  ;;  %v491_v62 = vadd.f32 %v489_v58, %v480_v55 }
  0xdf   : > { %v497_v63 = vadd.f32 %v1526_v56, %v490_v24  ;;  %v498_v36 = vadd.f32 %v1526_v56, %v491_v62  ;;  %788 = vrot.lane.b32.xlu1 %v1330_v37, %s1097_s21  ;;  %780 = vrot.lane.b32.xlu0 %v1337_v38, %s1096_s14 }
  0xe1   : > { %v1544_v45 = vmul.f32 0.5, %v497_v63  ;;  %v1546_v1 = vmul.f32 0.5, %v498_v36  ;;  %v531_v4 = vpop.permute.xlu1 %530  ;;  %v523_v5 = vpop.permute.xlu0 %522  ;;  %790 = vrot.lane.b32.xlu2 %v1337_v38, %s1097_s21  ;;  %s841_s21 = scalar_lea.vmem (%p1160_p6), %s1822_s4, %s996_s6 }
  0xe2   : > { %v524_v15 = vsel %vm408_vm0, %v1378_v60, %v523_v5  ;;  %v525_v16 = vsel %vm408_vm0, %v523_v5, %v1378_v60  ;;  %v534_v41 = vsel %vm419_vm1, %v531_v4, %v1438_v46  ;;  %v535_v60 = vsel %vm419_vm1, %v1438_v46, %v531_v4 }
  0xe3   : > { %vm505_vm8 = vcmp.ge.f32.partialorder %v1544_v45, 1.0  ;;  %vm506_vm9 = vcmp.ge.f32.partialorder %v1546_v1, 1.0  ;;  %v581_v11 = vpop.permute.xlu2 %580  ;;  %v526_v30 = vmul.f32 %v525_v16, %v1390_v2  ;;  %v527_v32 = vmul.f32 %v524_v15, %v1392_v3 }
  0xe4   : > { %v970_v8 = vsel %vm505_vm8, 1.0, %v1099_v7  ;;  %v971_v9 = vsel %vm506_vm9, 1.0, %v1099_v7  ;;  %v536_v43 = vmul.f32 %v535_v60, %v1397_v6  ;;  %v537_v46 = vmul.f32 %v534_v41, %v1403_v10 }
  0xe5   : > { %511 = vst [vmem:[%s1559_s12] sm:$0xff] %v970_v8  ;;  %v528_v28 = vadd.f32 %v526_v30, %v518_v49  ;;  %v529_v57 = vadd.f32 %v527_v32, %v519_v50 }
  0xe6   : > { %512 = vst [vmem:[%s1559_s12 + $0x8] sm:$0xff] %v971_v9 }
  0xe7   : > { %800 = vrot.lane.b32.xlu1 %v1337_v38, %s1098_s22  ;;  %798 = vrot.lane.b32.xlu0 %v1330_v37, %s1098_s22  ;;  %v538_v25 = vadd.f32 %v536_v43, %v528_v28  ;;  %v539_v58 = vadd.f32 %v537_v46, %v529_v57 }
  0xe9   : > { %v543_v12 = vpop.permute.xlu1 %542  ;;  %v541_v14 = vpop.permute.xlu0 %540 }
  0xea   : > { %v544_v29 = vsel %vm430_vm2, %v541_v14, %v543_v12  ;;  %v545_v51 = vsel %vm430_vm2, %v543_v12, %v541_v14 }
  0xeb   : > { %v593_v23 = vpop.permute.xlu2 %592  ;;  %v546_v54 = vmul.f32 %v545_v51, %v1430_v18  ;;  %v547_v31 = vmul.f32 %v544_v29, %v1441_v48 }
  0xed   : > { %v548_v4 = vadd.f32 %v546_v54, %v538_v25 }
  0xf1   : > { %v561_v42 = vpop.permute.xlu1 %560  ;;  %v553_v44 = vpop.permute.xlu0 %552 }
  0xf2   : > { %v554_v21 = vsel %vm441_vm3, %v1493_v17, %v553_v44  ;;  %v555_v22 = vsel %vm441_vm3, %v553_v44, %v1493_v17  ;;  %v549_v17 = vadd.f32 %v547_v31, %v539_v58  ;;  %v564_v5 = vsel %vm452_vm4, %v561_v42, %v563_v59 }
  0xf3   : > { %v1599_v55 = vpop.permute.xlu2 %634  ;;  %v556_v24 = vmul.f32 %v555_v22, %v1452_v52  ;;  %v557_v62 = vmul.f32 %v554_v21, %v1455_v53  ;;  %v565_v8 = vsel %vm452_vm4, %v563_v59, %v561_v42  ;;  %v566_v16 = vmul.f32 %v564_v5, %v1427_v39 }
  0xf4   : > { %v567_v30 = vmul.f32 %v565_v8, %v1461_v33 }
  0xf5   : > { %v558_v14 = vadd.f32 %v556_v24, %v548_v4  ;;  %v559_v15 = vadd.f32 %v557_v62, %v549_v17  ;;  %v514_v4 = vsel %vm506_vm9, 0.0, %v1546_v1 }
  0xf7   : > { %v568_v49 = vadd.f32 %v566_v16, %v558_v14  ;;  %v569_v50 = vadd.f32 %v567_v30, %v559_v15 }
  0xf9   : > { %v573_v63 = vpop.permute.xlu1 %572  ;;  %v571_v36 = vpop.permute.xlu0 %570 }
  0xfa   : > { %v574_v9 = vsel %vm463_vm5, %v571_v36, %v573_v63  ;;  %v575_v12 = vsel %vm463_vm5, %v573_v63, %v571_v36  ;;  %v513_v36 = vsel %vm505_vm8, 0.0, %v1544_v45 }
  0xfb   : > { %v576_v32 = vmul.f32 %v574_v9, %v1496_v20  ;;  %v577_v44 = vmul.f32 %v575_v12, %v1509_v40  ;;  %v647_v28 = vpop.permute.xlu2 %646 }
  0xfd   : > { %v578_v57 = vadd.f32 %v576_v32, %v568_v49  ;;  %v579_v21 = vadd.f32 %v577_v44, %v569_v50 }
 0x101   : > { %v591_v41 = vpop.permute.xlu1 %590  ;;  %v583_v59 = vpop.permute.xlu0 %582 }
 0x102   : > { %v594_v42 = vsel %vm485_vm7, %v591_v41, %v593_v23  ;;  %v595_v60 = vsel %vm485_vm7, %v593_v23, %v591_v41  ;;  %v584_v29 = vsel %vm474_vm6, %v581_v11, %v583_v59  ;;  %v585_v51 = vsel %vm474_vm6, %v583_v59, %v581_v11 }
 0x103   : > { %v586_v22 = vmul.f32 %v584_v29, %v1488_v13  ;;  %v587_v43 = vmul.f32 %v585_v51, %v1506_v19  ;;  %v596_v46 = vmul.f32 %v594_v42, %v1521_v34  ;;  %v597_v54 = vmul.f32 %v595_v60, %v1524_v35  ;;  %v665_v8 = vpop.permute.xlu2 %664 }
 0x105   : > { %v588_v31 = vadd.f32 %v586_v22, %v578_v57  ;;  %v589_v25 = vadd.f32 %v587_v43, %v579_v21 }
 0x107   : > { %v598_v23 = vadd.f32 %v596_v46, %v588_v31  ;;  %v599_v58 = vadd.f32 %v597_v54, %v589_v25  ;;  %v622_v25 = vmul.f32 %v1297_v27, %v1388_v0 }
 0x109   : > { %v600_v24 = vadd.f32 %v598_v23, %v1526_v56  ;;  %v601_v62 = vadd.f32 %v599_v58, %v1526_v56  ;;  %v627_v11 = vpop.permute.xlu1 %626  ;;  %v625_v63 = vpop.permute.xlu0 %624  ;;  %v623_v23 = vmul.f32 %v1294_v26, %v1381_v61 }
 0x10a   : > { %v628_v51 = vsel %vm408_vm0, %v625_v63, %v627_v11  ;;  %v629_v57 = vsel %vm408_vm0, %v627_v11, %v625_v63 }
 0x10b   : > { %v602_v17 = vsub.f32 %v600_v24, %v513_v36  ;;  %v603_v5 = vsub.f32 %v601_v62, %v514_v4  ;;  %v1648_v32 = vpop.permute.xlu2 %730  ;;  %v630_v43 = vmul.f32 %v629_v57, %v1390_v2  ;;  %v631_v46 = vmul.f32 %v628_v51, %v1392_v3 }
 0x10d   : > { %v604_v9 = vmul.f32 0.5, %v602_v17  ;;  %v605_v12 = vmul.f32 0.5, %v603_v5  ;;  %v632_v11 = vadd.f32 %v630_v43, %v622_v25  ;;  %v633_v63 = vadd.f32 %v631_v46, %v623_v23 }
 0x10f   : > { %v1635_v14 = vadd.f32 %v605_v12, %v514_v4  ;;  %v1637_v15 = vadd.f32 %v604_v9, %v513_v36 }
 0x111   : > { %v645_v16 = vpop.permute.xlu1 %644  ;;  %v637_v30 = vpop.permute.xlu0 %636  ;;  %vm609_vm10 = vcmp.ge.f32.partialorder %v1635_v14, 1.0  ;;  %vm608_vm11 = vcmp.ge.f32.partialorder %v1637_v15, 1.0 }
 0x112   : > { %v975_v45 = vsel %vm609_vm10, 1.0, %v1099_v7  ;;  %v974_v1 = vsel %vm608_vm11, 1.0, %v1099_v7  ;;  %v638_v21 = vsel %vm419_vm1, %v1599_v55, %v637_v30  ;;  %v639_v22 = vsel %vm419_vm1, %v637_v30, %v1599_v55 }
 0x113   : > { %977 = vst [vmem:[%s1559_s12 + $0x18] sm:$0xff] %v975_v45  ;;  %v1651_v50 = vpop.permute.xlu2 %738  ;;  %v640_v58 = vmul.f32 %v639_v22, %v1397_v6  ;;  %v641_v24 = vmul.f32 %v638_v21, %v1403_v10  ;;  %v648_v55 = vsel %vm430_vm2, %v645_v16, %v647_v28  ;;  %v649_v36 = vsel %vm430_vm2, %v647_v28, %v645_v16 }
 0x114   : > { %976 = vst [vmem:[%s1559_s12 + $0x10] sm:$0xff] %v974_v1  ;;  %v650_v12 = vmul.f32 %v649_v36, %v1430_v18  ;;  %v651_v30 = vmul.f32 %v648_v55, %v1441_v48 }
 0x115   : > { %v642_v26 = vadd.f32 %v640_v58, %v632_v11  ;;  %v643_v17 = vadd.f32 %v641_v24, %v633_v63 }
 0x117   : > { %v652_v51 = vadd.f32 %v650_v12, %v642_v26  ;;  %v653_v57 = vadd.f32 %v651_v30, %v643_v17 }
 0x119   : > { %v657_v44 = vpop.permute.xlu1 %656  ;;  %v655_v49 = vpop.permute.xlu0 %654 }
 0x11a   : > { %v658_v4 = vsel %vm441_vm3, %v655_v49, %v657_v44  ;;  %v659_v27 = vsel %vm441_vm3, %v657_v44, %v655_v49 }
 0x11b   : > { %v687_v29 = vpop.permute.xlu2 %686  ;;  %v660_v28 = vmul.f32 %v659_v27, %v1452_v52  ;;  %v661_v16 = vmul.f32 %v658_v4, %v1455_v53 }
 0x11d   : > { %v662_v43 = vadd.f32 %v660_v28, %v652_v51  ;;  %v663_v46 = vadd.f32 %v661_v16, %v653_v57 }
 0x121   : > { %v1653_v41 = vpop.permute.xlu1 %728  ;;  %v667_v59 = vpop.permute.xlu0 %666 }
 0x122   : > { %v668_v5 = vsel %vm452_vm4, %v665_v8, %v667_v59  ;;  %v669_v9 = vsel %vm452_vm4, %v667_v59, %v665_v8  ;;  %v733_v12 = vsel %vm408_vm0, %v1648_v32, %v1653_v41 }
 0x123   : > { %v695_v62 = vpop.permute.xlu2 %694  ;;  %v670_v8 = vmul.f32 %v668_v5, %v1427_v39  ;;  %v671_v59 = vmul.f32 %v669_v9, %v1461_v33  ;;  %v732_v9 = vsel %vm408_vm0, %v1653_v41, %v1648_v32  ;;  %v734_v51 = vmul.f32 %v733_v12, %v1390_v2 }
 0x124   : > { %v735_v57 = vmul.f32 %v732_v9, %v1392_v3  ;;  %v618_v32 = vsel %vm609_vm10, 0.0, %v1635_v14  ;;  %v617_v41 = vsel %vm608_vm11, 0.0, %v1637_v15 }
 0x129   : > { %v677_v42 = vpop.permute.xlu1 %676  ;;  %v675_v60 = vpop.permute.xlu0 %674 }
 0x12a   : > { %v678_v44 = vsel %vm463_vm5, %v675_v60, %v677_v42  ;;  %v679_v49 = vsel %vm463_vm5, %v677_v42, %v675_v60  ;;  %v672_v42 = vadd.f32 %v670_v8, %v662_v43  ;;  %v673_v60 = vadd.f32 %v671_v59, %v663_v46 }
 0x12b   : > { %v680_v25 = vmul.f32 %v678_v44, %v1496_v20  ;;  %v681_v23 = vmul.f32 %v679_v49, %v1509_v40  ;;  %v761_v58 = vpop.permute.xlu2 %760 }
 0x12d   : > { %v682_v63 = vadd.f32 %v680_v25, %v672_v42  ;;  %v683_v55 = vadd.f32 %v681_v23, %v673_v60 }
 0x131   : > { %v685_v54 = vpop.permute.xlu1 %684  ;;  %v741_v31 = vpop.permute.xlu0 %740 }
 0x132   : > { %v688_v21 = vsel %vm474_vm6, %v685_v54, %v687_v29  ;;  %v689_v22 = vsel %vm474_vm6, %v687_v29, %v685_v54  ;;  %v743_v16 = vsel %vm419_vm1, %v741_v31, %v1651_v50 }
 0x133   : > { %v690_v24 = vmul.f32 %v688_v21, %v1488_v13  ;;  %v691_v11 = vmul.f32 %v689_v22, %v1506_v19  ;;  %v779_v8 = vpop.permute.xlu2 %778  ;;  %v744_v3 = vmul.f32 %v743_v16, %v1397_v6 }
 0x135   : > { %v692_v27 = vadd.f32 %v690_v24, %v682_v63  ;;  %v693_v26 = vadd.f32 %v691_v11, %v683_v55 }
 0x139   : > { %v751_v45 = vpop.permute.xlu1 %750  ;;  %v749_v1 = vpop.permute.xlu0 %748 }
 0x13a   : > { %v752_v14 = vsel %vm430_vm2, %v749_v1, %v751_v45  ;;  %v753_v15 = vsel %vm430_vm2, %v751_v45, %v749_v1 }
 0x13b   : > { %v754_v6 = vmul.f32 %v753_v15, %v1430_v18  ;;  %v856_v15 = vld [vmem:[%s1559_s12 + $0x8] sm:$0xff] (%p1160_p6) }
 0x13c   : > { %857 = vst [vmem:[%s841_s21 + $0x8] sm:$0xff] (%p1160_p6), %v856_v15 }
 0x141   : > { %v759_v36 = vpop.permute.xlu1 %758  ;;  %v697_v4 = vpop.permute.xlu0 %696 }
 0x142   : > { %v698_v29 = vsel %vm485_vm7, %v695_v62, %v697_v4  ;;  %v699_v54 = vsel %vm485_vm7, %v697_v4, %v695_v62  ;;  %v742_v62 = vsel %vm419_vm1, %v1651_v50, %v741_v31  ;;  %v726_v50 = vmul.f32 %v1330_v37, %v1388_v0 }
 0x143   : > { %v700_v17 = vmul.f32 %v698_v29, %v1521_v34  ;;  %v701_v5 = vmul.f32 %v699_v54, %v1524_v35  ;;  %v727_v31 = vmul.f32 %v1337_v38, %v1381_v61  ;;  %v745_v43 = vmul.f32 %v742_v62, %v1403_v10 }
 0x144   : > { %v736_v37 = vadd.f32 %v734_v51, %v726_v50  ;;  %v762_v38 = vsel %vm441_vm3, %v759_v36, %v761_v58  ;;  %v763_v61 = vsel %vm441_vm3, %v761_v58, %v759_v36  ;;  %v755_v10 = vmul.f32 %v752_v14, %v1441_v48 }
 0x145   : > { %v702_v30 = vadd.f32 %v700_v17, %v692_v27  ;;  %v703_v28 = vadd.f32 %v701_v5, %v693_v26  ;;  %v737_v0 = vadd.f32 %v735_v57, %v727_v31  ;;  %v764_v11 = vmul.f32 %v763_v61, %v1452_v52  ;;  %v791_v17 = vpop.permute.xlu2 %790 }
 0x146   : > { %v746_v60 = vadd.f32 %v744_v3, %v736_v37  ;;  %v765_v58 = vmul.f32 %v762_v38, %v1455_v53 }
 0x147   : > { %v704_v44 = vadd.f32 %v702_v30, %v1526_v56  ;;  %v705_v49 = vadd.f32 %v703_v28, %v1526_v56  ;;  %v747_v24 = vadd.f32 %v745_v43, %v737_v0 }
 0x148   : > { %v756_v63 = vadd.f32 %v754_v6, %v746_v60 }
 0x149   : > { %v706_v59 = vsub.f32 %v704_v44, %v617_v41  ;;  %v707_v21 = vsub.f32 %v705_v49, %v618_v32  ;;  %v771_v2 = vpop.permute.xlu1 %770  ;;  %v769_v22 = vpop.permute.xlu0 %768  ;;  %v757_v55 = vadd.f32 %v755_v10, %v747_v24 }
 0x14a   : > { %v772_v45 = vsel %vm452_vm4, %v769_v22, %v771_v2  ;;  %v773_v1 = vsel %vm452_vm4, %v771_v2, %v769_v22  ;;  %v766_v27 = vadd.f32 %v764_v11, %v756_v63 }
 0x14b   : > { %v708_v46 = vmul.f32 0.5, %v706_v59  ;;  %v709_v25 = vmul.f32 0.5, %v707_v21  ;;  %v774_v36 = vmul.f32 %v772_v45, %v1427_v39  ;;  %v775_v4 = vmul.f32 %v773_v1, %v1461_v33 }
 0x14c   : > { %v767_v26 = vadd.f32 %v765_v58, %v757_v55 }
 0x14d   : > { %v710_v23 = vadd.f32 %v708_v46, %v617_v41  ;;  %v711_v42 = vadd.f32 %v709_v25, %v618_v32  ;;  %v776_v39 = vadd.f32 %v774_v36, %v766_v27  ;;  %v860_v46 = vld [vmem:[%s1559_s12 + $0x18] sm:$0xff] (%p1160_p6) }
 0x14e   : > { %v777_v12 = vadd.f32 %v775_v4, %v767_v26  ;;  %861 = vst [vmem:[%s841_s21 + $0x28] sm:$0xff] (%p1160_p6), %v860_v46 }
 0x14f   : > { %vm713_vm12 = vcmp.ge.f32.partialorder %v711_v42, 1.0  ;;  %vm712_vm13 = vcmp.ge.f32.partialorder %v710_v23, 1.0 }
 0x150   : > { %v981_v18 = vsel %vm713_vm12, 1.0, %v1099_v7  ;;  %v980_v48 = vsel %vm712_vm13, 1.0, %v1099_v7  ;;  %v722_v59 = vsel %vm713_vm12, 0.0, %v711_v42  ;;  %v721_v21 = vsel %vm712_vm13, 0.0, %v710_v23 }
 0x151   : > { %v789_v29 = vpop.permute.xlu1 %788  ;;  %v781_v54 = vpop.permute.xlu0 %780  ;;  %983 = vst [vmem:[%s1559_s12 + $0x28] sm:$0xff] %v981_v18 }
 0x152   : > { %v782_v52 = vsel %vm463_vm5, %v779_v8, %v781_v54  ;;  %v783_v53 = vsel %vm463_vm5, %v781_v54, %v779_v8  ;;  %982 = vst [vmem:[%s1559_s12 + $0x20] sm:$0xff] %v980_v48  ;;  %v792_v33 = vsel %vm474_vm6, %v789_v29, %v791_v17  ;;  %v793_v30 = vsel %vm474_vm6, %v791_v17, %v789_v29 }
 0x153   : > { %v784_v5 = vmul.f32 %v782_v52, %v1496_v20  ;;  %v785_v9 = vmul.f32 %v783_v53, %v1509_v40  ;;  %v794_v16 = vmul.f32 %v792_v33, %v1488_v13  ;;  %v795_v44 = vmul.f32 %v793_v30, %v1506_v19 }
 0x155   : > { %v786_v28 = vadd.f32 %v784_v5, %v776_v39  ;;  %v787_v62 = vadd.f32 %v785_v9, %v777_v12 }
 0x157   : > { %v796_v57 = vadd.f32 %v794_v16, %v786_v28  ;;  %v797_v32 = vadd.f32 %v795_v44, %v787_v62 }
 0x158   : > { %v864_v37 = vld [vmem:[%s1559_s12 + $0x28] sm:$0xff] (%p1160_p6) }
 0x159   : > { %v801_v49 = vpop.permute.xlu1 %800  ;;  %v799_v51 = vpop.permute.xlu0 %798  ;;  %v862_v25 = vld [vmem:[%s1559_s12 + $0x20] sm:$0xff] (%p1160_p6)  ;;  %865 = vst [vmem:[%s841_s21 + $0x48] sm:$0xff] (%p1160_p6), %v864_v37 }
 0x15a   : > { %v802_v20 = vsel %vm485_vm7, %v799_v51, %v801_v49  ;;  %v803_v40 = vsel %vm485_vm7, %v801_v49, %v799_v51  ;;  %863 = vst [vmem:[%s841_s21 + $0x40] sm:$0xff] (%p1160_p6), %v862_v25 }
 0x15b   : > { %v804_v41 = vmul.f32 %v802_v20, %v1521_v34  ;;  %v805_v8 = vmul.f32 %v803_v40, %v1524_v35 }
 0x15d   : > { %v806_v50 = vadd.f32 %v804_v41, %v796_v57  ;;  %v807_v31 = vadd.f32 %v805_v8, %v797_v32 }
 0x15f   : > { %v808_v13 = vadd.f32 %v806_v50, %v1526_v56  ;;  %v809_v19 = vadd.f32 %v807_v31, %v1526_v56  ;;  %v854_v56 = vld [vmem:[%s1559_s12] sm:$0xff] (%p1160_p6) }
 0x160   : > { %855 = vst [vmem:[%s841_s21] sm:$0xff] (%p1160_p6), %v854_v56 }
 0x161   : > { %v810_v47 = vsub.f32 %v808_v13, %v721_v21  ;;  %v811_v2 = vsub.f32 %v809_v19, %v722_v59 }
 0x163   : > { %v812_v22 = vmul.f32 0.5, %v810_v47  ;;  %v813_v3 = vmul.f32 0.5, %v811_v2 }
 0x165   : > { %v814_v43 = vadd.f32 %v812_v22, %v721_v21  ;;  %v815_v34 = vadd.f32 %v813_v3, %v722_v59 }
 0x166   : > { %835 = sbr.rel (!%p1160_p6) target bundleno = 371 (0x173), region = 67 }
 0x167   : > { %vm816_vm14 = vcmp.ge.f32.partialorder %v814_v43, 1.0  ;;  %vm817_vm15 = vcmp.ge.f32.partialorder %v815_v34, 1.0 }
 0x168   : > { %v986_v35 = vsel %vm816_vm14, 1.0, %v1099_v7  ;;  %v987_v14 = vsel %vm817_vm15, 1.0, %v1099_v7  ;;  %v858_v7 = vld [vmem:[%s1559_s12 + $0x10] sm:$0xff] (%p1160_p6) }
 0x169   : > { %988 = vst [vmem:[%s1559_s12 + $0x30] sm:$0xff] %v986_v35 }
 0x16a   : > { %989 = vst [vmem:[%s1559_s12 + $0x38] sm:$0xff] %v987_v14 }
 0x16b   : > { %859 = vst [vmem:[%s841_s21 + $0x20] sm:$0xff] %v858_v7 }
 0x170   : > { %v866_v0 = vld [vmem:[%s1559_s12 + $0x30] sm:$0xff] }
 0x171   : > { %v868_v38 = vld [vmem:[%s1559_s12 + $0x38] sm:$0xff]  ;;  %867 = vst [vmem:[%s841_s21 + $0x60] sm:$0xff] %v866_v0 }
 0x172   : > { %869 = vst [vmem:[%s841_s21 + $0x68] sm:$0xff] %v868_v38 }
 0x173 PF: > { %s14_s19 = sadd.s32 1, %s1088_s19   ;;  %s1824_s15 = smov %s1076_s16 }
 0x174   : > { %p11_p11 = scmp.ge.s32.totalorder %s14_s19, 4   ;;  %s1825_s16 = smov %s1165_s25 }
 0x175   : > { %s1826_s17 = smov %s1084_s18  ;;  %s1827_s18 = smov %s1829_s20 }
 0x176   :  { %13 = sbr.rel (!%p11_p11) target bundleno = 3 (0x3), region = 143 }

</bundles_post_ra>
